<compile_context>
chip_gen: v7x
topology: tpu7x:2x2x1
jax: 0.10.0
libtpu: 0.0.40
codegen_flags: <defaults>
</compile_context>

<pallas_src>
import jax
import jax.numpy as jnp
from jax.experimental import pallas as pl
from jax.experimental.pallas import tpu as pltpu


# ---------------------------------------------------------------------------
# Transposed im2col for a 3x3 / padding=1 conv:
#   (B', Cin, H, W) -> (Cin*9, B'*H*W)  with  B'*H*W on the (lane) minor axis.
#   Row order = (ci, dy, dx), column order = (b, y, x)  (b outermost).
# ---------------------------------------------------------------------------
def _im2col_t(x):
    Bp, Cin, H, W = x.shape
    xp = jnp.pad(x, ((0, 0), (0, 0), (1, 1), (1, 1)))
    cols = [xp[:, :, dy:dy + H, dx:dx + W] for dy in range(3) for dx in range(3)]
    pat = jnp.stack(cols, axis=0)              # (9, B', Cin, H, W)
    pat = pat.transpose(2, 0, 1, 3, 4)         # (Cin, 9, B', H, W)
    return pat.reshape(Cin * 9, Bp * H * W)


# ---------------------------------------------------------------------------
# Fused kernel.
#   a_ref : (32, 2M)  im2col of [x | mean_aug]  (ones-row at index Cin*9 = bias)
#   w_ref : (Cout, 32)  conv weights with bias folded into column Cin*9
#   ema_ref : (Cout, M)   -> outputs_ema (transposed layout)
#   loss_ref: (1, 1) SMEM  -> structure_loss scalar
# ---------------------------------------------------------------------------
def _make_fused_kernel(B, HW, Cout, M):
    inv_area = 1.0 / (31.0 * 31.0)   # 31x31 avg_pool, count_include_pad=True
    c_f = float(Cout)

    def kernel(a_ref, w_ref, ema_ref, loss_ref):
        # Single MXU call for both images (bias included via the ones-row).
        out = jnp.dot(w_ref[...], a_ref[...],
                      preferred_element_type=jnp.float32)        # (Cout, 2M)
        ema_ref[...] = out[:, M:]                                 # lane-aligned slice

        # Channel softmax of BOTH halves at once (axis=0 never mixes columns).
        mx = jnp.max(out, axis=0, keepdims=True)
        e = jnp.exp(out - mx)
        sm = e * pl.reciprocal(jnp.sum(e, axis=0, keepdims=True), approx=True)
        pred = sm[:, :M]          # F.softmax(outputs)       (Cout, M)
        mask = sm[:, M:]          # F.softmax(outputs_ema)   (Cout, M)

        # CrossEntropyLoss re-log-softmaxes pred; pred in (0,1] so no max-sub
        # needed.  Also precompute the second softmax and the per-pixel maps
        # once for the whole block.
        e2 = jnp.exp(pred)
        s2 = jnp.sum(e2, axis=0, keepdims=True)
        logp = pred - jnp.log(s2)
        pred_s = e2 * pl.reciprocal(s2, approx=True)
        wbce_pix = -jnp.sum(mask * logp, axis=0, keepdims=True)    # (1, M)
        inter_pix = jnp.sum(pred_s * mask, axis=0, keepdims=True)  # (1, M)
        union_pix = jnp.sum(pred_s + mask, axis=0, keepdims=True)  # (1, M)

        # Per-batch scalar reductions only (B is tiny; static unroll).
        loss_acc = 0.0
        for b in range(B):
            lo = b * HW
            hi = lo + HW
            mask_b = mask[:, lo:hi]                                # (Cout, HW)
            # 31x31 / pad-15 avg-pool on a <=16x16 map covers the whole plane
            # -> pooled is spatially constant = sum / 961 per channel.
            pooled_b = jnp.sum(mask_b, axis=1, keepdims=True) * inv_area  # (Cout,1)
            weit_b = c_f + 5.0 * jnp.sum(jnp.abs(pooled_b - mask_b),
                                         axis=0, keepdims=True)           # (1, HW)
            sw = jnp.sum(weit_b)
            wbce_b = jnp.sum(weit_b * wbce_pix[:, lo:hi]) / sw
            inter_b = jnp.sum(weit_b * inter_pix[:, lo:hi])
            union_b = jnp.sum(weit_b * union_pix[:, lo:hi])
            wiou_b = 1.0 - (inter_b + 1.0) / (union_b - inter_b + 1.0)
            loss_acc = loss_acc + wbce_b + wiou_b

        loss_ref[0, 0] = loss_acc * (1.0 / B)

    return kernel


# ---------------------------------------------------------------------------
# CoTTA.forward  (steps=1, episodic=False, to_aug=True)  -> (outputs_ema, loss)
# The wrapped "model" (and its deepcopy'd EMA / anchor copies) is a synthetic
# 3x3 Conv2d(Cin -> Cout, padding=1) with deterministic weights.
# ---------------------------------------------------------------------------
def cotta_forward(x, conv_w, conv_b, aug_key, n_aug=32):
    B, Cin, H, W = x.shape
    Cout = conv_w.shape[0]
    HW = H * W
    # In-kernel avg-pool shortcut requires the 31x31/pad-15 window to cover
    # the whole plane.
    assert H <= 16 and W <= 16
    # TODO(synk): general banded avg-pool path for H or W > 16.

    xf = x.astype(jnp.float32)

    # --- TTA mean collapsed to ONE depthwise 5x5 blur + mean noise ----------
    # blur_i(x) = x * (k_i (x) k_i) with reflect padding, model is linear, so
    # mean_i model(blur_i(x)+n_i) = model(x * mean_i(k_i (x) k_i) + mean_i n_i).
    ksig, knoise = jax.random.split(aug_key)
    sigmas = jax.random.uniform(ksig, (n_aug,), jnp.float32, 0.001, 0.25)
    r = jnp.arange(-2, 3, dtype=jnp.float32)
    k1 = jnp.exp(-0.5 * (r[None, :] / sigmas[:, None]) ** 2)
    k1 = k1 / jnp.sum(k1, axis=1, keepdims=True)                  # (N, 5)
    k2 = jnp.mean(k1[:, :, None] * k1[:, None, :], axis=0)        # (5, 5)
    xp = jnp.pad(xf, ((0, 0), (0, 0), (2, 2), (2, 2)), mode="reflect")
    w_blur = jnp.broadcast_to(k2, (Cin, 1, 5, 5)).astype(jnp.float32)
    blur_mean = jax.lax.conv_general_dilated(
        xp, w_blur, (1, 1), "VALID",
        dimension_numbers=("NCHW", "OIHW", "NCHW"),
        feature_group_count=Cin)                                  # (B, Cin, H, W)
    noise_mean = jnp.mean(
        0.005 * jax.random.normal(knoise, (n_aug,) + x.shape, jnp.float32), axis=0)
    aug_mean = blur_mean + noise_mean

    # --- ONE transposed im2col on [x | aug_mean], bias folded in ------------
    xcat = jnp.concatenate([xf, aug_mean], axis=0)                # (2B, Cin, H, W)
    a = _im2col_t(xcat)                                           # (Cin*9, 2*B*HW)
    K = Cin * 9
    M = B * HW
    Kp = 32                                                       # pad 27 -> 32 sublanes
    a_full = jnp.zeros((Kp, 2 * M), jnp.float32)
    a_full = a_full.at[:K].set(a).at[K].set(1.0)                  # ones row -> bias
    w_full = jnp.zeros((Cout, Kp), jnp.float32)
    w_full = w_full.at[:, :K].set(conv_w.reshape(Cout, K).astype(jnp.float32))
    w_full = w_full.at[:, K].set(conv_b.astype(jnp.float32))

    out_ema_t, loss_out = pl.pallas_call(
        _make_fused_kernel(B, HW, Cout, M),
        out_shape=(
            jax.ShapeDtypeStruct((Cout, M), jnp.float32),
            jax.ShapeDtypeStruct((1, 1), jnp.float32),
        ),
        grid=(1,),
        in_specs=[
            pl.BlockSpec((Kp, 2 * M), lambda i: (0, 0)),
            pl.BlockSpec((Cout, Kp), lambda i: (0, 0)),
        ],
        out_specs=(
            pl.BlockSpec((Cout, M), lambda i: (0, 0)),
            pl.BlockSpec(memory_space=pltpu.MemorySpace.SMEM),
        ),
        compiler_params=pltpu.CompilerParams(dimension_semantics=("arbitrary",)),
    )(a_full, w_full)

    outputs_ema = out_ema_t.reshape(Cout, B, H, W).transpose(1, 0, 2, 3)  # NCHW
    loss = loss_out[0, 0]
    return outputs_ema, loss


if __name__ == "__main__":
    key = jax.random.PRNGKey(0)
    kx, kw, kb, kaug = jax.random.split(key, 4)

    B, Cin, H, W = 2, 3, 16, 16
    Cout = 4  # number of segmentation classes

    x = jax.random.uniform(kx, (B, Cin, H, W), jnp.float32)
    conv_w = 0.1 * jax.random.normal(kw, (Cout, Cin, 3, 3), jnp.float32)
    conv_b = 0.01 * jax.random.normal(kb, (Cout,), jnp.float32)

    outputs_ema, loss = jax.jit(cotta_forward)(x, conv_w, conv_b, kaug)
    jax.block_until_ready((outputs_ema, loss))
    assert outputs_ema.shape == (B, Cout, H, W)
    assert loss.shape == ()
    assert bool(jnp.isfinite(loss))
    print("KERNEL_OK")
</pallas_src>

<mosaic_0001>
module attributes {stable_mosaic.version = 11 : i64} {
  func.func @kernel(%arg0: i32, %arg1: memref<32x1024xf32, #tpu.memory_space<vmem>>, %arg2: memref<4x32xf32, #tpu.memory_space<vmem>>, %arg3: memref<4x512xf32, #tpu.memory_space<vmem>>, %arg4: memref<1x1xf32, #tpu.memory_space<smem>>) attributes {dimension_semantics = [#tpu.dimension_semantics<arbitrary>], iteration_bounds = array<i64: 1>, scalar_prefetch = 0 : i64, scratch_operands = 0 : i64, tpu.core_type = #tpu.core_type<tc>, window_params = [{pipeline_mode = #tpu.pipeline_mode<synchronous>, transform_indices = @transform_0, window_bounds = array<i64: 32, 1024>}, {pipeline_mode = #tpu.pipeline_mode<synchronous>, transform_indices = @transform_1, window_bounds = array<i64: 4, 32>}, {pipeline_mode = #tpu.pipeline_mode<synchronous>, transform_indices = @transform_2, window_bounds = array<i64: 4, 512>}, {transform_indices = @transform_3, window_bounds = array<i64: 1, 1>}]} {
    %c0 = arith.constant 0 : index
    %c0_0 = arith.constant 0 : index
    %0 = vector.load %arg2[%c0, %c0_0] : memref<4x32xf32, #tpu.memory_space<vmem>>, vector<4x32xf32>
    %c0_1 = arith.constant 0 : index
    %c0_2 = arith.constant 0 : index
    %1 = vector.load %arg1[%c0_1, %c0_2] : memref<32x1024xf32, #tpu.memory_space<vmem>>, vector<32x1024xf32>
    %cst = arith.constant dense<0.000000e+00> : vector<4x1024xf32>
    %2 = tpu.matmul %0, %1, %cst {dimension_numbers = #tpu.dot_dimension_numbers<[1], [0], [0], [1], [0, 0, 1, 1], [], []>} : vector<4x32xf32>, vector<32x1024xf32>, vector<4x1024xf32> -> vector<4x1024xf32>
    %3 = vector.extract_strided_slice %2 {offsets = [0, 512], sizes = [4, 512], strides = [1, 1]} : vector<4x1024xf32> to vector<4x512xf32>
    %c0_3 = arith.constant 0 : index
    %c0_4 = arith.constant 0 : index
    %4 = vector.load %arg3[%c0_3, %c0_4] : memref<4x512xf32, #tpu.memory_space<vmem>>, vector<4x512xf32>
    tpu.vector_store %arg3[%c0_3, %c0_4], %3 {strides = array<i32>} : memref<4x512xf32, #tpu.memory_space<vmem>>, vector<4x512xf32>,
    %cst_5 = arith.constant dense<0xFF800000> : vector<1024xf32>
    %5 = vector.multi_reduction <maximumf>, %2, %cst_5 [0] : vector<4x1024xf32> to vector<1024xf32>
    %6 = vector.shape_cast %5 : vector<1024xf32> to vector<1x1024xf32>
    %7 = vector.broadcast %6 : vector<1x1024xf32> to vector<4x1024xf32>
    %8 = arith.subf %2, %7 : vector<4x1024xf32>
    %9 = math.exp %8 : vector<4x1024xf32>
    %cst_6 = arith.constant dense<0.000000e+00> : vector<1024xf32>
    %10 = vector.multi_reduction <add>, %9, %cst_6 [0] : vector<4x1024xf32> to vector<1024xf32>
    %11 = vector.shape_cast %10 : vector<1024xf32> to vector<1x1024xf32>
    %12 = tpu.reciprocal %11 {approx = true} : vector<1x1024xf32> -> vector<1x1024xf32>
    %13 = vector.broadcast %12 : vector<1x1024xf32> to vector<4x1024xf32>
    %14 = arith.mulf %9, %13 : vector<4x1024xf32>
    %15 = vector.extract_strided_slice %14 {offsets = [0, 0], sizes = [4, 512], strides = [1, 1]} : vector<4x1024xf32> to vector<4x512xf32>
    %16 = vector.extract_strided_slice %14 {offsets = [0, 512], sizes = [4, 512], strides = [1, 1]} : vector<4x1024xf32> to vector<4x512xf32>
    %17 = math.exp %15 : vector<4x512xf32>
    %cst_7 = arith.constant dense<0.000000e+00> : vector<512xf32>
    %18 = vector.multi_reduction <add>, %17, %cst_7 [0] : vector<4x512xf32> to vector<512xf32>
    %19 = vector.shape_cast %18 : vector<512xf32> to vector<1x512xf32>
    %20 = math.log %19 : vector<1x512xf32>
    %21 = vector.broadcast %20 : vector<1x512xf32> to vector<4x512xf32>
    %22 = arith.subf %15, %21 : vector<4x512xf32>
    %23 = tpu.reciprocal %19 {approx = true} : vector<1x512xf32> -> vector<1x512xf32>
    %24 = vector.broadcast %23 : vector<1x512xf32> to vector<4x512xf32>
    %25 = arith.mulf %17, %24 : vector<4x512xf32>
    %26 = arith.mulf %16, %22 : vector<4x512xf32>
    %cst_8 = arith.constant dense<0.000000e+00> : vector<512xf32>
    %27 = vector.multi_reduction <add>, %26, %cst_8 [0] : vector<4x512xf32> to vector<512xf32>
    %28 = vector.shape_cast %27 : vector<512xf32> to vector<1x512xf32>
    %cst_9 = arith.constant 0.000000e+00 : f32
    %29 = vector.broadcast %cst_9 : f32 to vector<1x512xf32>
    %30 = arith.subf %29, %28 : vector<1x512xf32>
    %31 = arith.mulf %25, %16 : vector<4x512xf32>
    %cst_10 = arith.constant dense<0.000000e+00> : vector<512xf32>
    %32 = vector.multi_reduction <add>, %31, %cst_10 [0] : vector<4x512xf32> to vector<512xf32>
    %33 = vector.shape_cast %32 : vector<512xf32> to vector<1x512xf32>
    %34 = arith.addf %25, %16 : vector<4x512xf32>
    %cst_11 = arith.constant dense<0.000000e+00> : vector<512xf32>
    %35 = vector.multi_reduction <add>, %34, %cst_11 [0] : vector<4x512xf32> to vector<512xf32>
    %36 = vector.shape_cast %35 : vector<512xf32> to vector<1x512xf32>
    %37 = vector.extract_strided_slice %16 {offsets = [0, 0], sizes = [4, 256], strides = [1, 1]} : vector<4x512xf32> to vector<4x256xf32>
    %cst_12 = arith.constant dense<0.000000e+00> : vector<4xf32>
    %38 = vector.multi_reduction <add>, %37, %cst_12 [1] : vector<4x256xf32> to vector<4xf32>
    %39 = vector.shape_cast %38 : vector<4xf32> to vector<4x1xf32>
    %cst_13 = arith.constant 0.00104058278 : f32
    %40 = vector.broadcast %cst_13 : f32 to vector<4x1xf32>
    %41 = arith.mulf %39, %40 : vector<4x1xf32>
    %42 = vector.broadcast %41 : vector<4x1xf32> to vector<4x256xf32>
    %43 = arith.subf %42, %37 : vector<4x256xf32>
    %44 = math.absf %43 : vector<4x256xf32>
    %cst_14 = arith.constant dense<0.000000e+00> : vector<256xf32>
    %45 = vector.multi_reduction <add>, %44, %cst_14 [0] : vector<4x256xf32> to vector<256xf32>
    %46 = vector.shape_cast %45 : vector<256xf32> to vector<1x256xf32>
    %cst_15 = arith.constant 5.000000e+00 : f32
    %47 = vector.broadcast %cst_15 : f32 to vector<1x256xf32>
    %48 = arith.mulf %47, %46 : vector<1x256xf32>
    %cst_16 = arith.constant 4.000000e+00 : f32
    %49 = vector.broadcast %cst_16 : f32 to vector<1x256xf32>
    %50 = arith.addf %49, %48 : vector<1x256xf32>
    %51 = vector.shape_cast %50 : vector<1x256xf32> to vector<1x1x256xf32>
    %cst_17 = arith.constant dense<0.000000e+00> : vector<1xf32>
    %52 = vector.multi_reduction <add>, %51, %cst_17 [1, 2] : vector<1x1x256xf32> to vector<1xf32>
    %53 = vector.shape_cast %52 : vector<1xf32> to vector<1x1x1xf32>
    %54 = vector.extract %53[0, 0, 0] : f32 from vector<1x1x1xf32>
    %55 = vector.extract_strided_slice %30 {offsets = [0, 0], sizes = [1, 256], strides = [1, 1]} : vector<1x512xf32> to vector<1x256xf32>
    %56 = arith.mulf %50, %55 : vector<1x256xf32>
    %57 = vector.shape_cast %56 : vector<1x256xf32> to vector<1x1x256xf32>
    %cst_18 = arith.constant dense<0.000000e+00> : vector<1xf32>
    %58 = vector.multi_reduction <add>, %57, %cst_18 [1, 2] : vector<1x1x256xf32> to vector<1xf32>
    %59 = vector.shape_cast %58 : vector<1xf32> to vector<1x1x1xf32>
    %60 = vector.extract %59[0, 0, 0] : f32 from vector<1x1x1xf32>
    %61 = arith.divf %60, %54 : f32
    %62 = vector.extract_strided_slice %33 {offsets = [0, 0], sizes = [1, 256], strides = [1, 1]} : vector<1x512xf32> to vector<1x256xf32>
    %63 = arith.mulf %50, %62 : vector<1x256xf32>
    %64 = vector.shape_cast %63 : vector<1x256xf32> to vector<1x1x256xf32>
    %cst_19 = arith.constant dense<0.000000e+00> : vector<1xf32>
    %65 = vector.multi_reduction <add>, %64, %cst_19 [1, 2] : vector<1x1x256xf32> to vector<1xf32>
    %66 = vector.shape_cast %65 : vector<1xf32> to vector<1x1x1xf32>
    %67 = vector.extract %66[0, 0, 0] : f32 from vector<1x1x1xf32>
    %68 = vector.extract_strided_slice %36 {offsets = [0, 0], sizes = [1, 256], strides = [1, 1]} : vector<1x512xf32> to vector<1x256xf32>
    %69 = arith.mulf %50, %68 : vector<1x256xf32>
    %70 = vector.shape_cast %69 : vector<1x256xf32> to vector<1x1x256xf32>
    %cst_20 = arith.constant dense<0.000000e+00> : vector<1xf32>
    %71 = vector.multi_reduction <add>, %70, %cst_20 [1, 2] : vector<1x1x256xf32> to vector<1xf32>
    %72 = vector.shape_cast %71 : vector<1xf32> to vector<1x1x1xf32>
    %73 = vector.extract %72[0, 0, 0] : f32 from vector<1x1x1xf32>
    %cst_21 = arith.constant 1.000000e+00 : f32
    %74 = arith.addf %67, %cst_21 : f32
    %75 = arith.subf %73, %67 : f32
    %cst_22 = arith.constant 1.000000e+00 : f32
    %76 = arith.addf %75, %cst_22 : f32
    %77 = arith.divf %74, %76 : f32
    %cst_23 = arith.constant 1.000000e+00 : f32
    %78 = arith.subf %cst_23, %77 : f32
    %cst_24 = arith.constant 0.000000e+00 : f32
    %79 = arith.addf %cst_24, %61 : f32
    %80 = arith.addf %79, %78 : f32
    %81 = vector.extract_strided_slice %16 {offsets = [0, 256], sizes = [4, 256], strides = [1, 1]} : vector<4x512xf32> to vector<4x256xf32>
    %cst_25 = arith.constant dense<0.000000e+00> : vector<4xf32>
    %82 = vector.multi_reduction <add>, %81, %cst_25 [1] : vector<4x256xf32> to vector<4xf32>
    %83 = vector.shape_cast %82 : vector<4xf32> to vector<4x1xf32>
    %cst_26 = arith.constant 0.00104058278 : f32
    %84 = vector.broadcast %cst_26 : f32 to vector<4x1xf32>
    %85 = arith.mulf %83, %84 : vector<4x1xf32>
    %86 = vector.broadcast %85 : vector<4x1xf32> to vector<4x256xf32>
    %87 = arith.subf %86, %81 : vector<4x256xf32>
    %88 = math.absf %87 : vector<4x256xf32>
    %cst_27 = arith.constant dense<0.000000e+00> : vector<256xf32>
    %89 = vector.multi_reduction <add>, %88, %cst_27 [0] : vector<4x256xf32> to vector<256xf32>
    %90 = vector.shape_cast %89 : vector<256xf32> to vector<1x256xf32>
    %cst_28 = arith.constant 5.000000e+00 : f32
    %91 = vector.broadcast %cst_28 : f32 to vector<1x256xf32>
    %92 = arith.mulf %91, %90 : vector<1x256xf32>
    %cst_29 = arith.constant 4.000000e+00 : f32
    %93 = vector.broadcast %cst_29 : f32 to vector<1x256xf32>
    %94 = arith.addf %93, %92 : vector<1x256xf32>
    %95 = vector.shape_cast %94 : vector<1x256xf32> to vector<1x1x256xf32>
    %cst_30 = arith.constant dense<0.000000e+00> : vector<1xf32>
    %96 = vector.multi_reduction <add>, %95, %cst_30 [1, 2] : vector<1x1x256xf32> to vector<1xf32>
    %97 = vector.shape_cast %96 : vector<1xf32> to vector<1x1x1xf32>
    %98 = vector.extract %97[0, 0, 0] : f32 from vector<1x1x1xf32>
    %99 = vector.extract_strided_slice %30 {offsets = [0, 256], sizes = [1, 256], strides = [1, 1]} : vector<1x512xf32> to vector<1x256xf32>
    %100 = arith.mulf %94, %99 : vector<1x256xf32>
    %101 = vector.shape_cast %100 : vector<1x256xf32> to vector<1x1x256xf32>
    %cst_31 = arith.constant dense<0.000000e+00> : vector<1xf32>
    %102 = vector.multi_reduction <add>, %101, %cst_31 [1, 2] : vector<1x1x256xf32> to vector<1xf32>
    %103 = vector.shape_cast %102 : vector<1xf32> to vector<1x1x1xf32>
    %104 = vector.extract %103[0, 0, 0] : f32 from vector<1x1x1xf32>
    %105 = arith.divf %104, %98 : f32
    %106 = vector.extract_strided_slice %33 {offsets = [0, 256], sizes = [1, 256], strides = [1, 1]} : vector<1x512xf32> to vector<1x256xf32>
    %107 = arith.mulf %94, %106 : vector<1x256xf32>
    %108 = vector.shape_cast %107 : vector<1x256xf32> to vector<1x1x256xf32>
    %cst_32 = arith.constant dense<0.000000e+00> : vector<1xf32>
    %109 = vector.multi_reduction <add>, %108, %cst_32 [1, 2] : vector<1x1x256xf32> to vector<1xf32>
    %110 = vector.shape_cast %109 : vector<1xf32> to vector<1x1x1xf32>
    %111 = vector.extract %110[0, 0, 0] : f32 from vector<1x1x1xf32>
    %112 = vector.extract_strided_slice %36 {offsets = [0, 256], sizes = [1, 256], strides = [1, 1]} : vector<1x512xf32> to vector<1x256xf32>
    %113 = arith.mulf %94, %112 : vector<1x256xf32>
    %114 = vector.shape_cast %113 : vector<1x256xf32> to vector<1x1x256xf32>
    %cst_33 = arith.constant dense<0.000000e+00> : vector<1xf32>
    %115 = vector.multi_reduction <add>, %114, %cst_33 [1, 2] : vector<1x1x256xf32> to vector<1xf32>
    %116 = vector.shape_cast %115 : vector<1xf32> to vector<1x1x1xf32>
    %117 = vector.extract %116[0, 0, 0] : f32 from vector<1x1x1xf32>
    %cst_34 = arith.constant 1.000000e+00 : f32
    %118 = arith.addf %111, %cst_34 : f32
    %119 = arith.subf %117, %111 : f32
    %cst_35 = arith.constant 1.000000e+00 : f32
    %120 = arith.addf %119, %cst_35 : f32
    %121 = arith.divf %118, %120 : f32
    %cst_36 = arith.constant 1.000000e+00 : f32
    %122 = arith.subf %cst_36, %121 : f32
    %123 = arith.addf %80, %105 : f32
    %124 = arith.addf %123, %122 : f32
    %cst_37 = arith.constant 5.000000e-01 : f32
    %125 = arith.mulf %124, %cst_37 : f32
    %c0_38 = arith.constant 0 : index
    %c0_39 = arith.constant 0 : index
    %126 = memref.load %arg4[%c0_38, %c0_39] : memref<1x1xf32, #tpu.memory_space<smem>>
    memref.store %125, %arg4[%c0_38, %c0_39] : memref<1x1xf32, #tpu.memory_space<smem>>
    return
  }
  func.func @transform_0(%arg0: i32) -> (i32, i32) {
    %c0_i32 = arith.constant 0 : i32
    %c0_i32_0 = arith.constant 0 : i32
    %c0_i32_1 = arith.constant 0 : i32
    return %c0_i32, %c0_i32_0 : i32, i32
  }
  func.func @transform_1(%arg0: i32) -> (i32, i32) {
    %c0_i32 = arith.constant 0 : i32
    %c0_i32_0 = arith.constant 0 : i32
    %c0_i32_1 = arith.constant 0 : i32
    return %c0_i32, %c0_i32_0 : i32, i32
  }
  func.func @transform_2(%arg0: i32) -> (i32, i32) {
    %c0_i32 = arith.constant 0 : i32
    %c0_i32_0 = arith.constant 0 : i32
    %c0_i32_1 = arith.constant 0 : i32
    return %c0_i32, %c0_i32_0 : i32, i32
  }
  func.func @transform_3(%arg0: i32) -> (i32, i32) {
    %c0_i32 = arith.constant 0 : i32
    %c0_i32_0 = arith.constant 0 : i32
    %c0_i32_1 = arith.constant 0 : i32
    return %c0_i32, %c0_i32_0 : i32, i32
  }
}

</mosaic_0001>

<bundles_post_ra>
// kernel: cotta_forward.3
= control target key start
LH: loop header
LB: loop body
LE: loop exit
PB: predicated region body
PF: predicated region fallthrough
CT: control target
= control target key end

     0   :  { %v1005_v7 = vmov 0.0   ;;  %vm47_vm0 = vcmask 261120   ;;  %s1302_s0 = inlined_call_operand.vmem [shape: f32[32,1024], index: 0, kind: input, shape index: {}]   ;;  %s1303_s1 = inlined_call_operand.vmem [shape: f32[4,32], index: 1, kind: input, shape index: {}]   ;;  %s1304_s2 = inlined_call_operand.vmem [shape: f32[4,512], index: 2, kind: output, shape index: {0}]   ;;  %s1305_s3 = inlined_call_operand.hbm [shape: f32[1,1], index: 3, kind: output, shape index: {1}]  }
   0x1   :  { %v16_v0 = vld [vmem:[%s1302_s0 + $0x8] sm:$0xff]  ;;  %v18_v2 = vld [vmem:[%s1302_s0 + $0x18] sm:$0xff]  ;;  %v15_v5 = vld [vmem:[%s1302_s0] sm:$0xff]  ;;  %115 = vmatprep.mubr.f32.mxu0 %v1005_v7  ;;  %186 = vmatprep.mubr.f32.mxu1 %v1005_v7 }
   0x2   :  { %v24_v1 = vld [vmem:[%s1302_s0 + $0x48] sm:$0xff]  ;;  %v26_v4 = vld [vmem:[%s1302_s0 + $0x58] sm:$0xff]  ;;  %v23_v6 = vld [vmem:[%s1302_s0 + $0x40] sm:$0xff] }
   0x3   :  { %v871_v3 = vpack.c.bf16 %v24_v1, %v16_v0  ;;  %v879_v8 = vpack.c.bf16 %v26_v4, %v18_v2  ;;  %v873_v9 = vpack.c.bf16 %v23_v6, %v15_v5  ;;  %v17_v10 = vld [vmem:[%s1302_s0 + $0x10] sm:$0xff]  ;;  %v32_v12 = vld [vmem:[%s1302_s0 + $0x88] sm:$0xff]  ;;  %v34_v15 = vld [vmem:[%s1302_s0 + $0x98] sm:$0xff] }
   0x4   :  { %v25_v11 = vld [vmem:[%s1302_s0 + $0x50] sm:$0xff]  ;;  %v40_v14 = vld [vmem:[%s1302_s0 + $0xc8] sm:$0xff]  ;;  %v42_v16 = vld [vmem:[%s1302_s0 + $0xd8] sm:$0xff] }
   0x5   :  { %872 = vmatprep.subr.bf16.mxu0 %v871_v3  ;;  %v881_v13 = vpack.c.bf16 %v25_v11, %v17_v10  ;;  %880 = vmatprep.subr.bf16.mxu1 %v879_v8  ;;  %v875_v17 = vpack.c.bf16 %v40_v14, %v32_v12  ;;  %v883_v18 = vpack.c.bf16 %v42_v16, %v34_v15  ;;  %v31_v19 = vld [vmem:[%s1302_s0 + $0x80] sm:$0xff]  ;;  %v33_v21 = vld [vmem:[%s1302_s0 + $0x90] sm:$0xff]  ;;  %v20_v24 = vld [vmem:[%s1302_s0 + $0x28] sm:$0xff] }
   0x6   :  { %874 = vmatpush1.bf16.msra.mxu0 %v873_v9  ;;  %v39_v20 = vld [vmem:[%s1302_s0 + $0xc0] sm:$0xff]  ;;  %v41_v23 = vld [vmem:[%s1302_s0 + $0xd0] sm:$0xff]  ;;  %v28_v27 = vld [vmem:[%s1302_s0 + $0x68] sm:$0xff] }
   0x7   :  { %882 = vmatpush1.bf16.msra.mxu1 %v881_v13  ;;  %v877_v22 = vpack.c.bf16 %v39_v20, %v31_v19  ;;  %876 = vmatprep.subr.bf16.mxu0 %v875_v17  ;;  %v885_v25 = vpack.c.bf16 %v41_v23, %v33_v21  ;;  %v14_v26 = vld [vmem:[%s1303_s1] sm:$0xf]  ;;  %v22_v28 = vld [vmem:[%s1302_s0 + $0x38] sm:$0xff]  ;;  %v887_v30 = vpack.c.bf16 %v28_v27, %v20_v24  ;;  %v21_v34 = vld [vmem:[%s1302_s0 + $0x30] sm:$0xff] }
   0x8   :  { %884 = vmatprep.subr.bf16.mxu1 %v883_v18  ;;  %v30_v29 = vld [vmem:[%s1302_s0 + $0x78] sm:$0xff]  ;;  %v19_v32 = vld [vmem:[%s1302_s0 + $0x20] sm:$0xff]  ;;  %v29_v36 = vld [vmem:[%s1302_s0 + $0x70] sm:$0xff] }
   0x9   :  { %v895_v31 = vpack.c.bf16 %v30_v29, %v22_v28  ;;  %v27_v33 = vld [vmem:[%s1302_s0 + $0x60] sm:$0xff]  ;;  %v36_v37 = vld [vmem:[%s1302_s0 + $0xa8] sm:$0xff]  ;;  %v897_v39 = vpack.c.bf16 %v29_v36, %v21_v34  ;;  %v38_v41 = vld [vmem:[%s1302_s0 + $0xb8] sm:$0xff] }
   0xa   :  { %878 = vmatpush1.bf16.msra.mxu0 %v877_v22  ;;  %v889_v35 = vpack.c.bf16 %v27_v33, %v19_v32  ;;  %v44_v38 = vld [vmem:[%s1302_s0 + $0xe8] sm:$0xff]  ;;  %v46_v42 = vld [vmem:[%s1302_s0 + $0xf8] sm:$0xff]  ;;  %v35_v43 = vld [vmem:[%s1302_s0 + $0xa0] sm:$0xff] }
   0xb   :  { %886 = vmatpush1.bf16.msra.mxu1 %v885_v25  ;;  %888 = vmatprep.subr.bf16.mxu0 %v887_v30  ;;  %v891_v40 = vpack.c.bf16 %v44_v38, %v36_v37  ;;  %v899_v44 = vpack.c.bf16 %v46_v42, %v38_v41  ;;  %v43_v45 = vld [vmem:[%s1302_s0 + $0xe0] sm:$0xff]  ;;  %v37_v46 = vld [vmem:[%s1302_s0 + $0xb0] sm:$0xff] }
   0xc   :  { %896 = vmatprep.subr.bf16.mxu1 %v895_v31  ;;  %v45_v47 = vld [vmem:[%s1302_s0 + $0xf0] sm:$0xff] }
   0xd   :  { %867 = vmatmul.mubr.msk.f32.vlgmr.msra.gmra.mrb[0].mxu0 %vm47_vm0, %v14_v26 }
   0xe   :  { %9 = vsyncpa [#allocation3], 0  ;;  %868 = vmatmul.mubr.msk.f32.vlgmr.msra.gmra.mrb[0].mxu1 %vm47_vm0, %v14_v26  ;;  %890 = vmatpush1.bf16.msra.mxu0 %v889_v35  ;;  %v893_v48 = vpack.c.bf16 %v43_v45, %v35_v43  ;;  %v901_v49 = vpack.c.bf16 %v45_v47, %v37_v46  ;;  %vm345_vm1 = vcmask 1043456   ;;  %vm682_vm2 = vcmask 1040384  }
   0xf   :  { %898 = vmatpush1.bf16.msra.mxu1 %v897_v39  ;;  %892 = vmatprep.subr.bf16.mxu0 %v891_v40 }
  0x10   :  { %900 = vmatprep.subr.bf16.mxu1 %v899_v44  ;;  %257 = vmatprep.mubr.f32.mxu0 %v1005_v7 }
  0x11   :  { %328 = vmatprep.mubr.f32.mxu1 %v1005_v7 }
  0x12   :  { %894 = vmatpush1.bf16.msra.mxu0 %v893_v48 }
  0x13   :  { %902 = vmatpush1.bf16.msra.mxu1 %v901_v49 }
  0x15   :  { %869 = vmatmul.mubr.msk.f32.vlgmr.msra.gmra.mrb[2].mxu0 %vm47_vm0, %v14_v26 }
  0x16   :  { %870 = vmatmul.mubr.msk.f32.vlgmr.msra.gmra.mrb[2].mxu1 %vm47_vm0, %v14_v26 }
  0xe0   :  { %v1134_v50 = vpop.f32.mrb[0].mxu0 }
  0xe1   :  { %v1136_v51 = vpop.f32.mrb[1].mxu0  ;;  %v1138_v52 = vpop.f32.mrb[0].mxu1  ;;  %v346_v31 = vsel %vm345_vm1, %v1134_v50, -inf }
  0xe2   :  { %v1140_v53 = vpop.f32.mrb[1].mxu1  ;;  %v347_v33 = vrot.slane %v346_v31, 4  ;;  %v353_v35 = vsel %vm345_vm1, %v1136_v51, -inf }
  0xe3   :  { %v354_v42 = vrot.slane %v353_v35, 4 }
  0xe4   :  { %v348_v41 = vmax.f32 %v346_v31, %v347_v33 }
  0xe6   :  { %v349_v49 = vrot.slane %v348_v41, 2 }
  0xe8   :  { %v259_v54 = vpop.f32.mrb[2].mxu0 }
  0xe9   :  { %v374_v55 = vsel %vm345_vm1, %v259_v54, -inf  ;;  %v330_v56 = vpop.f32.mrb[2].mxu1  ;;  %v261_v57 = vpop.f32.mrb[3].mxu0 }
  0xea   :  { %v375_v58 = vrot.slane %v374_v55, 4  ;;  %v388_v59 = vsel %vm345_vm1, %v330_v56, -inf  ;;  %v332_v60 = vpop.f32.mrb[3].mxu1  ;;  %v339_v62 = vcombine.low %v259_v54, %v261_v57  ;;  %v381_v0 = vsel %vm345_vm1, %v261_v57, -inf }
  0xeb   :  { %v389_v61 = vrot.slane %v388_v59, 4  ;;  %v382_v2 = vrot.slane %v381_v0, 4  ;;  %v340_v4 = vcombine.low %v330_v56, %v332_v60  ;;  %v395_v8 = vsel %vm345_vm1, %v332_v60, -inf }
  0xec   :  { %v376_v63 = vmax.f32 %v374_v55, %v375_v58  ;;  %343 = vst [vmem:[%s1304_s2] sm:$0xff] %v339_v62  ;;  %v396_v12 = vrot.slane %v395_v8, 4 }
  0xed   :  { %v390_v1 = vmax.f32 %v388_v59, %v389_v61  ;;  %v383_v6 = vmax.f32 %v381_v0, %v382_v2  ;;  %344 = vst [vmem:[%s1304_s2 + $0x8] sm:$0xff] %v340_v4  ;;  %v360_v59 = vsel %vm345_vm1, %v1138_v52, -inf  ;;  %v350_v2 = vmax.f32 %v348_v41, %v349_v49 }
  0xee   :  { %v377_v3 = vrot.slane %v376_v63, 2  ;;  %v397_v16 = vmax.f32 %v395_v8, %v396_v12 }
  0xef   :  { %v391_v5 = vrot.slane %v390_v1, 2  ;;  %v384_v10 = vrot.slane %v383_v6, 2  ;;  %v351_v12 = vrot.slane %v350_v2, 1 }
  0xf0   :  { %v378_v7 = vmax.f32 %v376_v63, %v377_v3  ;;  %v398_v20 = vrot.slane %v397_v16, 2  ;;  %v367_v63 = vsel %vm345_vm1, %v1140_v53, -inf }
  0xf1   :  { %v392_v9 = vmax.f32 %v390_v1, %v391_v5  ;;  %v385_v14 = vmax.f32 %v383_v6, %v384_v10  ;;  %v361_v6 = vrot.slane %v360_v59, 4 }
  0xf2   :  { %v379_v11 = vrot.slane %v378_v7, 1  ;;  %v399_v24 = vmax.f32 %v397_v16, %v398_v20  ;;  %v352_v20 = vmax.f32 %v350_v2, %v351_v12 }
  0xf3   :  { %v393_v13 = vrot.slane %v392_v9, 1  ;;  %v386_v18 = vrot.slane %v385_v14, 1  ;;  %v362_v16 = vmax.f32 %v360_v59, %v361_v6 }
  0xf4   :  { %v380_v15 = vmax.f32 %v378_v7, %v379_v11  ;;  %v400_v27 = vrot.slane %v399_v24, 1 }
  0xf5   :  { %v394_v17 = vmax.f32 %v392_v9, %v393_v13  ;;  %v387_v22 = vmax.f32 %v385_v14, %v386_v18  ;;  %v368_v9 = vrot.slane %v367_v63, 4 }
  0xf6   :  { %v406_v19 = vsub.f32 %v259_v54, %v380_v15  ;;  %v401_v29 = vmax.f32 %v399_v24, %v400_v27  ;;  %v355_v54 = vmax.f32 %v353_v35, %v354_v42 }
  0xf7   :  { %v408_v21 = vsub.f32 %v330_v56, %v394_v17  ;;  %v407_v26 = vsub.f32 %v261_v57, %v387_v22  ;;  %v369_v18 = vmax.f32 %v367_v63, %v368_v9  ;;  %v363_v22 = vrot.slane %v362_v16, 2 }
  0xf8   :  { %v418_v23 = vmul.f32 1.442695, %v406_v19  ;;  %v409_v30 = vsub.f32 %v332_v60, %v401_v29  ;;  %v356_v3 = vrot.slane %v355_v54, 2 }
  0xf9   :  { %v422_v25 = vmul.f32 1.442695, %v408_v21  ;;  %v420_v28 = vmul.f32 1.442695, %v407_v26 }
  0xfa   :  { %929 = vpow2.f32 %v418_v23  ;;  %v424_v32 = vmul.f32 1.442695, %v409_v30  ;;  %v357_v13 = vmax.f32 %v355_v54, %v356_v3  ;;  %v370_v23 = vrot.slane %v369_v18, 2 }
  0xfb   :  { %931 = vpow2.f32 %v422_v25  ;;  %v402_v25 = vsub.f32 %v1134_v50, %v352_v20 }
  0xfc   :  { %933 = vpow2.f32 %v420_v28  ;;  %v358_v21 = vrot.slane %v357_v13, 1  ;;  %v364_v28 = vmax.f32 %v362_v16, %v363_v22  ;;  %v371_v29 = vmax.f32 %v369_v18, %v370_v23 }
  0xfd   :  { %935 = vpow2.f32 %v424_v32  ;;  %v410_v32 = vmul.f32 1.442695, %v402_v25 }
  0xfe   :  { %v359_v26 = vmax.f32 %v357_v13, %v358_v21  ;;  %v365_v35 = vrot.slane %v364_v28, 1  ;;  %v372_v41 = vrot.slane %v371_v29, 1 }
 0x100   :  { %v403_v33 = vsub.f32 %v1136_v51, %v359_v26 }
 0x102   :  { %v412_v42 = vmul.f32 1.442695, %v403_v33 }
 0x104   :  { %v930_v34 = vpop.eup %929 }
 0x105   :  { %v1156_v36 = vpop.eup %931  ;;  %v454_v37 = vsel %vm345_vm1, %v930_v34, 0.0 }
 0x106   :  { %v455_v38 = vrot.slane %v454_v37, 4  ;;  %v468_v39 = vsel %vm345_vm1, %v1156_v36, 0.0  ;;  %v934_v40 = vpop.eup %933 }
 0x107   :  { %v469_v43 = vrot.slane %v468_v39, 4  ;;  %v461_v45 = vsel %vm345_vm1, %v934_v40, 0.0  ;;  %v936_v57 = vpop.eup %935 }
 0x108   :  { %v456_v44 = vadd.f32 %v455_v38, %v454_v37  ;;  %v462_v47 = vrot.slane %v461_v45, 4  ;;  %v475_v62 = vsel %vm345_vm1, %v936_v57, 0.0 }
 0x109   :  { %v470_v46 = vadd.f32 %v469_v43, %v468_v39  ;;  %v476_v1 = vrot.slane %v475_v62, 4 }
 0x10a   :  { %v457_v48 = vrot.slane %v456_v44, 2  ;;  %v463_v56 = vadd.f32 %v462_v47, %v461_v45  ;;  %v373_v45 = vmax.f32 %v371_v29, %v372_v41 }
 0x10b   :  { %v471_v55 = vrot.slane %v470_v46, 2  ;;  %v477_v8 = vadd.f32 %v476_v1, %v475_v62 }
 0x10c   :  { %v458_v58 = vadd.f32 %v457_v48, %v456_v44  ;;  %v464_v61 = vrot.slane %v463_v56, 2  ;;  %v405_v48 = vsub.f32 %v1140_v53, %v373_v45 }
 0x10d   :  { %v472_v60 = vadd.f32 %v471_v55, %v470_v46  ;;  %v478_v11 = vrot.slane %v477_v8, 2 }
 0x10e   :  { %v459_v0 = vrot.slane %v458_v58, 1  ;;  %v465_v5 = vadd.f32 %v464_v61, %v463_v56  ;;  %v416_v56 = vmul.f32 1.442695, %v405_v48 }
 0x10f   :  { %v473_v4 = vrot.slane %v472_v60, 1  ;;  %v479_v17 = vadd.f32 %v478_v11, %v477_v8 }
 0x110   :  { %v460_v7 = vadd.f32 %v459_v0, %v458_v58  ;;  %v466_v10 = vrot.slane %v465_v5, 1 }
 0x111   :  { %v474_v14 = vadd.f32 %v473_v4, %v472_v60  ;;  %v480_v19 = vrot.slane %v479_v17, 1 }
 0x112   :  { %937 = vrcp.f32 %v460_v7  ;;  %v467_v15 = vadd.f32 %v466_v10, %v465_v5 }
 0x113   :  { %v481_v24 = vadd.f32 %v480_v19, %v479_v17 }
 0x114   :  { %939 = vrcp.f32 %v467_v15 }
 0x115   :  { %941 = vrcp.f32 %v474_v14 }
 0x116   :  { %943 = vrcp.f32 %v481_v24 }
 0x117   :  { %945 = vpow2.f32 %v410_v32 }
 0x118   :  { %947 = vpow2.f32 %v412_v42 }
 0x11c   :  { %v938_v27 = vpop.eup %937 }
 0x11d   :  { %v1168_v30 = vmul.f32 %v938_v27, %v930_v34  ;;  %v366_v34 = vmax.f32 %v364_v28, %v365_v35 }
 0x11e   :  { %v940_v31 = vpop.eup %939 }
 0x11f   :  { %v1171_v37 = vmul.f32 %v940_v31, %v934_v40  ;;  %v654_v38 = vsel %vm345_vm1, %v1168_v30, 0.0  ;;  %v942_v39 = vpop.eup %941  ;;  %v404_v40 = vsub.f32 %v1138_v52, %v366_v34 }
 0x120   :  { %v1178_v44 = vmul.f32 %v942_v39, %v1156_v36  ;;  %v944_v51 = vpop.eup %943 }
 0x121   :  { %v655_v50 = vsel %vm345_vm1, %v1171_v37, 0.0  ;;  %v1181_v46 = vmul.f32 %v944_v51, %v936_v57  ;;  %v414_v55 = vmul.f32 1.442695, %v404_v40  ;;  %v946_v36 = vpop.eup %945 }
 0x122   :  { %v656_v43 = vadd.f32 %v655_v50, %v654_v38  ;;  %v751_v47 = vsel %vm345_vm1, %v1178_v44, 0.0  ;;  %v426_v58 = vsel %vm345_vm1, %v946_v36, 0.0  ;;  %v948_v59 = vpop.eup %947 }
 0x123   :  { %v752_v49 = vsel %vm345_vm1, %v1181_v46, 0.0  ;;  %949 = vpow2.f32 %v414_v55  ;;  %v427_v52 = vrot.slane %v426_v58, 4  ;;  %v433_v57 = vsel %vm345_vm1, %v948_v59, 0.0 }
 0x124   :  { %657 = vadd.xlane.f32.xlu0 %v656_v43  ;;  %v753_v54 = vadd.f32 %v752_v49, %v751_v47  ;;  %951 = vpow2.f32 %v416_v56  ;;  %v434_v61 = vrot.slane %v433_v57, 4 }
 0x125   :  { %v428_v60 = vadd.f32 %v427_v52, %v426_v58 }
 0x126   :  { %754 = vadd.xlane.f32.xlu1 %v753_v54  ;;  %v435_v0 = vadd.f32 %v434_v61, %v433_v57 }
 0x127   :  { %v429_v63 = vrot.slane %v428_v60, 2 }
 0x128   :  { %v436_v4 = vrot.slane %v435_v0, 2 }
 0x129   :  { %v430_v3 = vadd.f32 %v429_v63, %v428_v60 }
 0x12a   :  { %v437_v8 = vadd.f32 %v436_v4, %v435_v0 }
 0x12b   :  { %v431_v7 = vrot.slane %v430_v3, 1 }
 0x12c   :  { %v438_v12 = vrot.slane %v437_v8, 1 }
 0x12d   :  { %v950_v62 = vpop.eup %949  ;;  %v432_v11 = vadd.f32 %v431_v7, %v430_v3 }
 0x12e   :  { %v952_v53 = vpop.eup %951  ;;  %v440_v1 = vsel %vm345_vm1, %v950_v62, 0.0  ;;  %v439_v15 = vadd.f32 %v438_v12, %v437_v8 }
 0x12f   :  { %v447_v2 = vsel %vm345_vm1, %v952_v53, 0.0  ;;  %v441_v5 = vrot.slane %v440_v1, 4  ;;  %953 = vrcp.f32 %v432_v11 }
 0x130   :  { %v448_v6 = vrot.slane %v447_v2, 4  ;;  %955 = vrcp.f32 %v439_v15 }
 0x131   :  { %v442_v9 = vadd.f32 %v441_v5, %v440_v1 }
 0x132   :  { %v449_v10 = vadd.f32 %v448_v6, %v447_v2 }
 0x133   :  { %v443_v13 = vrot.slane %v442_v9, 2 }
 0x134   :  { %v450_v14 = vrot.slane %v449_v10, 2 }
 0x135   :  { %v444_v16 = vadd.f32 %v443_v13, %v442_v9 }
 0x136   :  { %v451_v17 = vadd.f32 %v450_v14, %v449_v10 }
 0x137   :  { %v445_v18 = vrot.slane %v444_v16, 1 }
 0x138   :  { %v452_v19 = vrot.slane %v451_v17, 1 }
 0x139   :  { %v446_v20 = vadd.f32 %v445_v18, %v444_v16  ;;  %v954_v21 = vpop.eup %953 }
 0x13a   :  { %v453_v22 = vadd.f32 %v452_v19, %v451_v17  ;;  %v1192_v23 = vmul.f32 %v954_v21, %v946_v36  ;;  %v956_v24 = vpop.eup %955 }
 0x13b   :  { %957 = vrcp.f32 %v446_v20  ;;  %v1195_v26 = vmul.f32 %v956_v24, %v948_v59 }
 0x13c   :  { %959 = vrcp.f32 %v453_v22  ;;  %v498_v25 = vmul.f32 1.442695, %v1192_v23 }
 0x13d   :  { %v500_v27 = vmul.f32 1.442695, %v1195_v26 }
 0x13e   :  { %961 = vpow2.f32 %v498_v25 }
 0x13f   :  { %963 = vpow2.f32 %v500_v27 }
 0x145   :  { %v958_v28 = vpop.eup %957 }
 0x146   :  { %v960_v29 = vpop.eup %959  ;;  %v1198_v31 = vmul.f32 %v958_v28, %v950_v62 }
 0x147   :  { %v1200_v32 = vmul.f32 %v960_v29, %v952_v53 }
 0x148   :  { %v502_v33 = vmul.f32 1.442695, %v1198_v31  ;;  %v962_v35 = vpop.eup %961 }
 0x149   :  { %v504_v38 = vmul.f32 1.442695, %v1200_v32  ;;  %v506_v39 = vsel %vm345_vm1, %v962_v35, 0.0  ;;  %v964_v41 = vpop.eup %963 }
 0x14a   :  { %965 = vpow2.f32 %v502_v33  ;;  %v507_v50 = vrot.slane %v506_v39, 4  ;;  %v513_v42 = vsel %vm345_vm1, %v964_v41, 0.0 }
 0x14b   :  { %967 = vpow2.f32 %v504_v38  ;;  %v514_v34 = vrot.slane %v513_v42, 4 }
 0x14c   :  { %v508_v43 = vadd.f32 %v507_v50, %v506_v39 }
 0x14d   :  { %v515_v47 = vadd.f32 %v514_v34, %v513_v42 }
 0x14e   :  { %v509_v40 = vrot.slane %v508_v43, 2 }
 0x14f   :  { %v516_v55 = vrot.slane %v515_v47, 2 }
 0x150   :  { %v510_v54 = vadd.f32 %v509_v40, %v508_v43 }
 0x151   :  { %v517_v59 = vadd.f32 %v516_v55, %v515_v47 }
 0x152   :  { %v511_v58 = vrot.slane %v510_v54, 1 }
 0x153   :  { %v518_v61 = vrot.slane %v517_v59, 1 }
 0x154   :  { %v1206_v45 = vpop.eup %965  ;;  %v512_v60 = vadd.f32 %v511_v58, %v510_v54 }
 0x155   :  { %v1208_v51 = vpop.eup %967  ;;  %v520_v48 = vsel %vm345_vm1, %v1206_v45, 0.0  ;;  %v519_v63 = vadd.f32 %v518_v61, %v517_v59 }
 0x156   :  { %v527_v49 = vsel %vm345_vm1, %v1208_v51, 0.0  ;;  %v521_v36 = vrot.slane %v520_v48, 4  ;;  %969 = vlog2.f32 %v512_v60 }
 0x157   :  { %v528_v56 = vrot.slane %v527_v49, 4  ;;  %971 = vrcp.f32 %v512_v60 }
 0x158   :  { %v522_v52 = vadd.f32 %v521_v36, %v520_v48  ;;  %973 = vlog2.f32 %v519_v63 }
 0x159   :  { %v529_v57 = vadd.f32 %v528_v56, %v527_v49  ;;  %975 = vrcp.f32 %v519_v63 }
 0x15a   :  { %v523_v62 = vrot.slane %v522_v52, 2 }
 0x15b   :  { %v530_v53 = vrot.slane %v529_v57, 2 }
 0x15c   :  { %v524_v0 = vadd.f32 %v523_v62, %v522_v52 }
 0x15d   :  { %v531_v1 = vadd.f32 %v530_v53, %v529_v57 }
 0x15e   :  { %v525_v2 = vrot.slane %v524_v0, 1 }
 0x15f   :  { %v532_v3 = vrot.slane %v531_v1, 1 }
 0x160   :  { %v526_v4 = vadd.f32 %v525_v2, %v524_v0  ;;  %v970_v5 = vpop.eup %969 }
 0x161   :  { %v533_v6 = vadd.f32 %v532_v3, %v531_v1  ;;  %v972_v7 = vpop.eup %971  ;;  %v535_v8 = vmul.f32 0.6931472, %v970_v5 }
 0x162   :  { %977 = vlog2.f32 %v526_v4  ;;  %v974_v9 = vpop.eup %973  ;;  %v550_v13 = vmul.f32 %v972_v7, %v962_v35 }
 0x163   :  { %979 = vlog2.f32 %v533_v6  ;;  %v976_v10 = vpop.eup %975  ;;  %v542_v11 = vsub.f32 %v1192_v23, %v535_v8  ;;  %v537_v12 = vmul.f32 0.6931472, %v974_v9 }
 0x164   :  { %v551_v14 = vmul.f32 %v976_v10, %v964_v41  ;;  %v590_v17 = vmul.f32 %v550_v13, %v1168_v30  ;;  %v622_v20 = vadd.f32 %v550_v13, %v1168_v30  ;;  %981 = vrcp.f32 %v526_v4 }
 0x165   :  { %v543_v15 = vsub.f32 %v1195_v26, %v537_v12  ;;  %v554_v16 = vmul.f32 %v542_v11, %v1168_v30  ;;  %983 = vrcp.f32 %v533_v6 }
 0x166   :  { %v591_v19 = vmul.f32 %v551_v14, %v1171_v37  ;;  %v594_v24 = vsel %vm345_vm1, %v590_v17, 0.0  ;;  %v626_v28 = vsel %vm345_vm1, %v622_v20, 0.0  ;;  %v623_v35 = vadd.f32 %v551_v14, %v1171_v37 }
 0x167   :  { %v555_v22 = vmul.f32 %v543_v15, %v1171_v37  ;;  %v558_v23 = vsel %vm345_vm1, %v554_v16, 0.0  ;;  %v595_v33 = vrot.slane %v594_v24, 4  ;;  %v627_v41 = vrot.slane %v626_v28, 4 }
 0x168   :  { %v601_v27 = vsel %vm345_vm1, %v591_v19, 0.0  ;;  %v559_v29 = vrot.slane %v558_v23, 4  ;;  %v633_v47 = vsel %vm345_vm1, %v623_v35, 0.0 }
 0x169   :  { %v565_v38 = vsel %vm345_vm1, %v555_v22, 0.0  ;;  %v602_v39 = vrot.slane %v601_v27, 4  ;;  %v596_v40 = vadd.f32 %v595_v33, %v594_v24  ;;  %v628_v54 = vadd.f32 %v627_v41, %v626_v28 }
 0x16a   :  { %v560_v43 = vadd.f32 %v559_v29, %v558_v23  ;;  %v566_v34 = vrot.slane %v565_v38, 4  ;;  %v634_v36 = vrot.slane %v633_v47, 4 }
 0x16b   :  { %v603_v49 = vadd.f32 %v602_v39, %v601_v27  ;;  %v597_v52 = vrot.slane %v596_v40, 2  ;;  %v629_v60 = vrot.slane %v628_v54, 2 }
 0x16c   :  { %v978_v18 = vpop.eup %977  ;;  %v561_v58 = vrot.slane %v560_v43, 2  ;;  %v567_v59 = vadd.f32 %v566_v34, %v565_v38  ;;  %v635_v62 = vadd.f32 %v634_v36, %v633_v47 }
 0x16d   :  { %v980_v21 = vpop.eup %979  ;;  %v539_v25 = vmul.f32 0.6931472, %v978_v18  ;;  %v598_v1 = vadd.f32 %v597_v52, %v596_v40  ;;  %v630_v7 = vadd.f32 %v629_v60, %v628_v54 }
 0x16e   :  { %v541_v26 = vmul.f32 0.6931472, %v980_v21  ;;  %v982_v48 = vpop.eup %981  ;;  %v562_v63 = vadd.f32 %v561_v58, %v560_v43  ;;  %v568_v0 = vrot.slane %v567_v59, 2  ;;  %v636_v14 = vrot.slane %v635_v62, 2 }
 0x16f   :  { %v544_v50 = vsub.f32 %v1198_v31, %v539_v25  ;;  %v984_v55 = vpop.eup %983  ;;  %v552_v31 = vmul.f32 %v982_v48, %v1206_v45  ;;  %v599_v13 = vrot.slane %v598_v1, 1  ;;  %v631_v20 = vrot.slane %v630_v7, 1 }
 0x170   :  { %v545_v42 = vsub.f32 %v1200_v32, %v541_v26  ;;  %v604_v32 = vrot.slane %v603_v49, 2  ;;  %v553_v61 = vmul.f32 %v984_v55, %v1208_v51  ;;  %v563_v11 = vrot.slane %v562_v63, 1 }
 0x171   :  { %v556_v56 = vmul.f32 %v544_v50, %v1178_v44  ;;  %v592_v3 = vmul.f32 %v552_v31, %v1178_v44  ;;  %v624_v4 = vadd.f32 %v552_v31, %v1178_v44  ;;  %v569_v12 = vadd.f32 %v568_v0, %v567_v59 }
 0x172   :  { %v557_v57 = vmul.f32 %v545_v42, %v1181_v46  ;;  %v605_v6 = vadd.f32 %v604_v32, %v603_v49  ;;  %v593_v45 = vmul.f32 %v553_v61, %v1181_v46  ;;  %v625_v8 = vadd.f32 %v553_v61, %v1181_v46 }
 0x173   :  { %v572_v53 = vsel %vm345_vm1, %v556_v56, 0.0  ;;  %v608_v17 = vsel %vm345_vm1, %v592_v3, 0.0  ;;  %v640_v18 = vsel %vm345_vm1, %v624_v4, 0.0  ;;  %v1246_v27 = vadd.f32 %v563_v11, %v562_v63 }
 0x174   :  { %v579_v2 = vsel %vm345_vm1, %v557_v57, 0.0  ;;  %v573_v9 = vrot.slane %v572_v53, 4  ;;  %v606_v19 = vrot.slane %v605_v6, 1  ;;  %v615_v21 = vsel %vm345_vm1, %v593_v45, 0.0 }
 0x175   :  { %v580_v10 = vrot.slane %v579_v2, 4  ;;  %v647_v22 = vsel %vm345_vm1, %v625_v8, 0.0  ;;  %v637_v28 = vadd.f32 %v636_v14, %v635_v62  ;;  %v641_v29 = vrot.slane %v640_v18, 4 }
 0x176   :  { %v574_v25 = vadd.f32 %v573_v9, %v572_v53  ;;  %v616_v35 = vrot.slane %v615_v21, 4  ;;  %v648_v38 = vrot.slane %v647_v22, 4  ;;  %v570_v42 = vrot.slane %v569_v12, 1 }
 0x177   :  { %v581_v26 = vadd.f32 %v580_v10, %v579_v2  ;;  %v1250_v43 = vadd.f32 %v599_v13, %v598_v1  ;;  %v1252_v40 = vadd.f32 %v631_v20, %v630_v7  ;;  %v642_v36 = vadd.f32 %v641_v29, %v640_v18 }
 0x178   :  { %v575_v47 = vrot.slane %v574_v25, 2  ;;  %v617_v59 = vadd.f32 %v616_v35, %v615_v21  ;;  %v649_v52 = vadd.f32 %v648_v38, %v647_v22  ;;  %v607_v32 = vadd.f32 %v606_v19, %v605_v6 }
 0x179   :  { %v582_v48 = vrot.slane %v581_v26, 2  ;;  %v638_v60 = vrot.slane %v637_v28, 1  ;;  %v643_v3 = vrot.slane %v642_v36, 2  ;;  %v586_v9 = vsub.f32 0.0, %v1246_v27 }
 0x17a   :  { %v576_v53 = vadd.f32 %v575_v47, %v574_v25 }
 0x17b   :  { %v583_v63 = vadd.f32 %v582_v48, %v581_v26  ;;  %v644_v19 = vadd.f32 %v643_v3, %v642_v36  ;;  %v639_v26 = vadd.f32 %v638_v60, %v637_v28 }
 0x17c   :  { %v577_v10 = vrot.slane %v576_v53, 1 }
 0x17d   :  { %v584_v11 = vrot.slane %v583_v63, 1 }
 0x1b1   :  { %v658_v5 = vpop.xlane.xlu0 %657 }
 0x1b2   :  { %v659_v51 = vmul.f32 0.0010405828, %v658_v5  ;;  %v650_v5 = vrot.slane %v649_v52, 2 }
 0x1b3   :  { %v755_v39 = vpop.xlane.xlu1 %754 }
 0x1b4   :  { %v660_v15 = vsub.f32 %v659_v51, %v1168_v30  ;;  %v661_v16 = vsub.f32 %v659_v51, %v1171_v37  ;;  %v609_v30 = vrot.slane %v608_v17, 4  ;;  %v756_v34 = vmul.f32 0.0010405828, %v755_v39 }
 0x1b5   :  { %v571_v51 = vadd.f32 %v570_v42, %v569_v12  ;;  %v651_v20 = vadd.f32 %v650_v5, %v649_v52  ;;  %v585_v12 = vadd.f32 %v584_v11, %v583_v63  ;;  %v645_v39 = vrot.slane %v644_v19, 1 }
 0x1b6   :  { %v662_v23 = vand.u32 2147483647, %v660_v15  ;;  %v663_v24 = vand.u32 2147483647, %v661_v16  ;;  %v610_v55 = vadd.f32 %v609_v30, %v608_v17  ;;  %v757_v56 = vsub.f32 %v756_v34, %v1178_v44 }
 0x1b7   :  { %v758_v58 = vsub.f32 %v756_v34, %v1181_v46  ;;  %v618_v46 = vrot.slane %v617_v59, 2  ;;  %v587_v25 = vsub.f32 0.0, %v571_v51  ;;  %v578_v30 = vadd.f32 %v577_v10, %v576_v53 }
 0x1b8   :  { %v664_v37 = vsel %vm345_vm1, %v662_v23, 0.0  ;;  %v671_v33 = vsel %vm345_vm1, %v663_v24, 0.0  ;;  %v759_v61 = vand.u32 2147483647, %v757_v56  ;;  %v611_v2 = vrot.slane %v610_v55, 2 }
 0x1b9   :  { %v665_v41 = vrot.slane %v664_v37, 4  ;;  %v672_v50 = vrot.slane %v671_v33, 4  ;;  %v760_v62 = vand.u32 2147483647, %v758_v58  ;;  %v619_v18 = vadd.f32 %v618_v46, %v617_v59 }
 0x1ba   :  { %v761_v4 = vsel %vm345_vm1, %v759_v61, 0.0  ;;  %v612_v17 = vadd.f32 %v611_v2, %v610_v55  ;;  %v589_v3 = vsub.f32 0.0, %v585_v12  ;;  %v646_v46 = vadd.f32 %v645_v39, %v644_v19 }
 0x1bb   :  { %v666_v49 = vadd.f32 %v665_v41, %v664_v37  ;;  %v673_v54 = vadd.f32 %v672_v50, %v671_v33  ;;  %v768_v44 = vsel %vm345_vm1, %v760_v62, 0.0  ;;  %v762_v7 = vrot.slane %v761_v4, 4 }
 0x1bc   :  { %v769_v45 = vrot.slane %v768_v44, 4  ;;  %v613_v35 = vrot.slane %v612_v17, 1  ;;  %v620_v38 = vrot.slane %v619_v18, 1  ;;  %v652_v41 = vrot.slane %v651_v20, 1 }
 0x1bd   :  { %v667_v57 = vrot.slane %v666_v49, 2  ;;  %v674_v31 = vrot.slane %v673_v54, 2  ;;  %v763_v13 = vadd.f32 %v762_v7, %v761_v4 }
 0x1be   :  { %v770_v14 = vadd.f32 %v769_v45, %v768_v44  ;;  %v614_v4 = vadd.f32 %v613_v35, %v612_v17  ;;  %v621_v44 = vadd.f32 %v620_v38, %v619_v18  ;;  %v653_v5 = vadd.f32 %v652_v41, %v651_v20 }
 0x1bf   :  { %v668_v0 = vadd.f32 %v667_v57, %v666_v49  ;;  %v675_v1 = vadd.f32 %v674_v31, %v673_v54  ;;  %v764_v21 = vrot.slane %v763_v13, 2 }
 0x1c0   :  { %v771_v22 = vrot.slane %v770_v14, 2 }
 0x1c1   :  { %v669_v8 = vrot.slane %v668_v0, 1  ;;  %v676_v6 = vrot.slane %v675_v1, 1  ;;  %v765_v29 = vadd.f32 %v764_v21, %v763_v13 }
 0x1c2   :  { %v772_v27 = vadd.f32 %v771_v22, %v770_v14 }
 0x1c3   :  { %v670_v15 = vadd.f32 %v669_v8, %v668_v0  ;;  %v677_v16 = vadd.f32 %v676_v6, %v675_v1  ;;  %v766_v50 = vrot.slane %v765_v29, 1  ;;  %v588_v0 = vsub.f32 0.0, %v578_v30 }
 0x1c4   :  { %v773_v42 = vrot.slane %v772_v27, 1 }
 0x1c5   :  { %v678_v23 = vmul.f32 5.0, %v670_v15  ;;  %v679_v24 = vmul.f32 5.0, %v677_v16  ;;  %v767_v55 = vadd.f32 %v766_v50, %v765_v29 }
 0x1c6   :  { %v774_v36 = vadd.f32 %v773_v42, %v772_v27 }
 0x1c7   :  { %v680_v37 = vadd.f32 4.0, %v678_v23  ;;  %v681_v33 = vadd.f32 4.0, %v679_v24  ;;  %v775_v60 = vmul.f32 5.0, %v767_v55 }
 0x1c8   :  { %v776_v61 = vmul.f32 5.0, %v774_v36 }
 0x1c9   :  { %v683_v34 = vsel %vm682_vm2, %v680_v37, 0.0  ;;  %v684_v47 = vsel %vm682_vm2, %v681_v33, 0.0  ;;  %v695_v49 = vmul.f32 %v680_v37, %v586_v9  ;;  %v696_v54 = vmul.f32 %v681_v33, %v587_v25 }
 0x1ca   :  { %v685_v48 = vadd.f32 %v684_v47, %v683_v34  ;;  %v713_v28 = vmul.f32 %v680_v37, %v1250_v43  ;;  %v714_v56 = vmul.f32 %v681_v33, %v607_v32  ;;  %v727_v58 = vmul.f32 %v680_v37, %v1252_v40 }
 0x1cb   :  { %v697_v59 = vsel %vm682_vm2, %v695_v49, 0.0  ;;  %v698_v52 = vsel %vm682_vm2, %v696_v54, 0.0  ;;  %v728_v31 = vmul.f32 %v681_v33, %v639_v26  ;;  %v777_v1 = vadd.f32 4.0, %v775_v60 }
 0x1cc   :  { %686 = vadd.xlane.f32.xlu0 %v685_v48  ;;  %v715_v57 = vsel %vm682_vm2, %v713_v28, 0.0  ;;  %v699_v62 = vadd.f32 %v698_v52, %v697_v59  ;;  %v716_v53 = vsel %vm682_vm2, %v714_v56, 0.0  ;;  %v729_v43 = vsel %vm682_vm2, %v727_v58, 0.0 }
 0x1cd   :  { %v717_v63 = vadd.f32 %v716_v53, %v715_v57  ;;  %v730_v32 = vsel %vm682_vm2, %v728_v31, 0.0  ;;  %v778_v2 = vadd.f32 4.0, %v776_v61  ;;  %v779_v7 = vsel %vm682_vm2, %v777_v1, 0.0 }
 0x1ce   :  { %700 = vadd.xlane.f32.xlu1 %v699_v62  ;;  %v731_v40 = vadd.f32 %v730_v32, %v729_v43  ;;  %v791_v8 = vmul.f32 %v777_v1, %v588_v0  ;;  %v809_v9 = vmul.f32 %v777_v1, %v614_v4  ;;  %v823_v11 = vmul.f32 %v777_v1, %v646_v46 }
 0x1cf   :  { %v780_v45 = vsel %vm682_vm2, %v778_v2, 0.0  ;;  %v792_v6 = vmul.f32 %v778_v2, %v589_v3  ;;  %v810_v10 = vmul.f32 %v778_v2, %v621_v44  ;;  %v824_v15 = vmul.f32 %v778_v2, %v653_v5 }
 0x1d0   :  { %718 = vadd.xlane.f32.xlu0 %v717_v63  ;;  %v781_v51 = vadd.f32 %v780_v45, %v779_v7  ;;  %v793_v13 = vsel %vm682_vm2, %v791_v8, 0.0  ;;  %v811_v17 = vsel %vm682_vm2, %v809_v9, 0.0  ;;  %v825_v19 = vsel %vm682_vm2, %v823_v11, 0.0 }
 0x1d1   :  { %v794_v14 = vsel %vm682_vm2, %v792_v6, 0.0  ;;  %v812_v18 = vsel %vm682_vm2, %v810_v10, 0.0  ;;  %v826_v21 = vsel %vm682_vm2, %v824_v15, 0.0 }
 0x1d2   :  { %732 = vadd.xlane.f32.xlu1 %v731_v40  ;;  %v795_v16 = vadd.f32 %v794_v14, %v793_v13  ;;  %v813_v20 = vadd.f32 %v812_v18, %v811_v17  ;;  %v827_v22 = vadd.f32 %v826_v21, %v825_v19 }
 0x1d4   :  { %782 = vadd.xlane.f32.xlu0 %v781_v51 }
 0x1d6   :  { %796 = vadd.xlane.f32.xlu1 %v795_v16 }
 0x1d8   :  { %814 = vadd.xlane.f32.xlu0 %v813_v20 }
 0x1da   :  { %828 = vadd.xlane.f32.xlu1 %v827_v22 }
 0x259   :  { %v687_v23 = vpop.xlane.xlu0 %686 }
 0x25a   :  { %v688_v24 = vrot.slane %v687_v23, 4 }
 0x25b   :  { %v701_v26 = vpop.xlane.xlu1 %700 }
 0x25c   :  { %v689_v25 = vadd.f32 %v688_v24, %v687_v23  ;;  %v702_v30 = vrot.slane %v701_v26, 4 }
 0x25d   :  { %v719_v50 = vpop.xlane.xlu0 %718 }
 0x25e   :  { %v690_v12 = vrot.slane %v689_v25, 2  ;;  %v703_v29 = vadd.f32 %v702_v30, %v701_v26  ;;  %v720_v34 = vrot.slane %v719_v50, 4 }
 0x25f   :  { %v733_v42 = vpop.xlane.xlu1 %732 }
 0x260   :  { %v691_v27 = vadd.f32 %v690_v12, %v689_v25  ;;  %v704_v37 = vrot.slane %v703_v29, 2  ;;  %v734_v47 = vrot.slane %v733_v42, 4  ;;  %v721_v48 = vadd.f32 %v720_v34, %v719_v50 }
 0x261   :  { %v783_v60 = vpop.xlane.xlu0 %782 }
 0x262   :  { %v692_v33 = vrot.slane %v691_v27, 1  ;;  %v705_v35 = vadd.f32 %v704_v37, %v703_v29  ;;  %v735_v49 = vadd.f32 %v734_v47, %v733_v42  ;;  %v722_v54 = vrot.slane %v721_v48, 2 }
 0x263   :  { %v797_v61 = vpop.xlane.xlu1 %796  ;;  %v784_v62 = vrot.slane %v783_v60, 4 }
 0x264   :  { %v693_v38 = vadd.f32 %v692_v33, %v691_v27  ;;  %v706_v39 = vrot.slane %v705_v35, 1  ;;  %v736_v28 = vrot.slane %v735_v49, 2  ;;  %v723_v36 = vadd.f32 %v722_v54, %v721_v48 }
 0x265   :  { %v798_v53 = vrot.slane %v797_v61, 4  ;;  %v785_v63 = vadd.f32 %v784_v62, %v783_v60  ;;  %v815_v7 = vpop.xlane.xlu0 %814 }
 0x266   :  { %903 = vpush %v693_v38  ;;  %v707_v41 = vadd.f32 %v706_v39, %v705_v35  ;;  %v737_v56 = vadd.f32 %v736_v28, %v735_v49  ;;  %v724_v58 = vrot.slane %v723_v36, 1  ;;  %v816_v8 = vrot.slane %v815_v7, 4 }
 0x267   :  { %v799_v43 = vadd.f32 %v798_v53, %v797_v61  ;;  %v786_v32 = vrot.slane %v785_v63, 2  ;;  %v829_v45 = vpop.xlane.xlu1 %828 }
 0x268   :  { %905 = vpush %v707_v41  ;;  %v738_v59 = vrot.slane %v737_v56, 1  ;;  %v725_v57 = vadd.f32 %v724_v58, %v723_v36  ;;  %v830_v6 = vrot.slane %v829_v45, 4  ;;  %v817_v51 = vadd.f32 %v816_v8, %v815_v7 }
 0x269   :  { %v800_v0 = vrot.slane %v799_v43, 2  ;;  %v787_v1 = vadd.f32 %v786_v32, %v785_v63 }
 0x26a   :  { %v739_v31 = vadd.f32 %v738_v59, %v737_v56  ;;  %v831_v9 = vadd.f32 %v830_v6, %v829_v45  ;;  %v818_v10 = vrot.slane %v817_v51, 2 }
 0x26b   :  { %v801_v2 = vadd.f32 %v800_v0, %v799_v43  ;;  %v788_v3 = vrot.slane %v787_v1, 1 }
 0x26c   :  { %v832_v11 = vrot.slane %v831_v9, 2  ;;  %v819_v14 = vadd.f32 %v818_v10, %v817_v51 }
 0x26d   :  { %v802_v4 = vrot.slane %v801_v2, 1  ;;  %v789_v46 = vadd.f32 %v788_v3, %v787_v1 }
 0x26e   :  { %v833_v15 = vadd.f32 %v832_v11, %v831_v9  ;;  %v820_v16 = vrot.slane %v819_v14, 1 }
 0x26f   :  { %v803_v5 = vadd.f32 %v802_v4, %v801_v2 }
 0x270   :  { %v834_v17 = vrot.slane %v833_v15, 1  ;;  %v821_v19 = vadd.f32 %v820_v16, %v819_v14 }
 0x272   :  { %v835_v20 = vadd.f32 %v834_v17, %v833_v15 }
 0x297   :  { %s904_s2 = spop %903 }
 0x298   :  { %v709_v55 = vstv %s904_s2  ;;  %s993_s2 = scalar_lea.hbm %s1305_s3, 16 }
 0x299   :  { %985 = vrcp.f32 %v709_v55  ;;  %s1277_s26 = spop %905  ;;  %p994_p0 = scmp.ne.s32.totalorder %s1305_s3, %s993_s2 }
 0x29a   :  { %p997_p1 = scmp.lt.u32.totalorder %s993_s2, %s1305_s3 }
 0x29c   :  { %p999_p2 = pnand %p997_p1, %p994_p0 }
 0x2a3   :  { %v986_v52 = vpop.eup %985 }
 0x2a4   :  { %907 = vpush %v986_v52 }
 0x2a5   :  { %909 = vpush %v725_v57 }
 0x2a6   :  { %911 = vpush %v739_v31 }
 0x2d5   :  { %s1279_s27 = spop %907 }
 0x2d6   :  { %s712_s28 = smul.f32 %s1279_s27, %s1277_s26  ;;  %s1283_s29 = spop %909 }
 0x2d7   :  { %s912_s1 = spop %911  ;;  %s741_s5 = sadd.f32 1.0, %s1283_s29 }
 0x2d8   :  { %s742_s30 = ssub.f32 %s912_s1, %s1283_s29 }
 0x2da   :  { %s743_s4 = sadd.f32 1.0, %s742_s30 }
 0x2dc   :  { %v744_v40 = vstv %s743_s4 }
 0x2dd   :  { %987 = vrcp.f32 %v744_v40 }
 0x2e7   :  { %v988_v44 = vpop.eup %987 }
 0x2e8   :  { %913 = vpush %v988_v44 }
 0x2e9   :  { %915 = vpush %v789_v46 }
 0x2ea   :  { %917 = vpush %v803_v5 }
 0x319   :  { %s914_s6 = spop %913 }
 0x31a   :  { %s747_s7 = smul.f32 %s914_s6, %s741_s5  ;;  %s916_s8 = spop %915 }
 0x31b   :  { %v805_v13 = vstv %s916_s8  ;;  %s918_s11 = spop %917 }
 0x31c   :  { %s748_s9 = ssub.f32 1.0, %s747_s7  ;;  %989 = vrcp.f32 %v805_v13 }
 0x31e   :  { %s750_s10 = sadd.f32 %s748_s9, %s712_s28 }
 0x326   :  { %v990_v18 = vpop.eup %989 }
 0x327   :  { %919 = vpush %v990_v18 }
 0x328   :  { %921 = vpush %v821_v19 }
 0x329   :  { %923 = vpush %v835_v20 }
 0x358   :  { %s920_s12 = spop %919 }
 0x359   :  { %s808_s13 = smul.f32 %s920_s12, %s918_s11  ;;  %s922_s14 = spop %921 }
 0x35a   :  { %s924_s15 = spop %923  ;;  %s837_s19 = sadd.f32 1.0, %s922_s14 }
 0x35b   :  { %s845_s16 = sadd.f32 %s808_s13, %s750_s10 }
 0x35c   :  { %s838_s17 = ssub.f32 %s924_s15, %s922_s14 }
 0x35e   :  { %s839_s18 = sadd.f32 1.0, %s838_s17 }
 0x360   :  { %v840_v21 = vstv %s839_s18 }
 0x361   :  { %991 = vrcp.f32 %v840_v21 }
 0x36b   :  { %v992_v22 = vpop.eup %991 }
 0x36c   :  { %925 = vpush %v992_v22 }
 0x39d   :  { %s926_s20 = spop %925 }
 0x39e   :  { %s843_s21 = smul.f32 %s926_s20, %s837_s19 }
 0x3a0   :  { %s844_s22 = ssub.f32 1.0, %s843_s21 }
 0x3a2   :  { %s846_s0 = sadd.f32 %s845_s16, %s844_s22 }
 0x3a4   :  { %s847_s23 = smul.f32 0.5, %s846_s0 }
 0x3a6   :  { %849 = sst [smem:[#allocation2]] %s847_s23 }
 0x3a7   :  { %1002 = shalt.err (!%p999_p2)
}
 0x3a8   :  { %s1006_s1 = smov [#allocation2]  }
 0x3a9   :  { %859 = dma.smem_to_hbm %s1006_s1, 16, %s1305_s3, [#allocation3]  }
 0x3aa   :  { %1003 = dma.done.wait [#allocation3], 16  }
 0x3ab   :  { %1004 = vsyncadd [#allocation3], 4294967280 }
 0x3ac   :  { %865 = sfence }
 0x3ad   :  { %866 = vsyncpa [#allocation3], 1 }

</bundles_post_ra>
